<compile_context>
chip_gen: v7x
topology: tpu7x:2x2x1
jax: 0.10.0
libtpu: 0.0.40
codegen_flags: <defaults>
</compile_context>

<pallas_src>
import functools
import math

import jax
import jax.numpy as jnp
from jax.experimental import pallas as pl
from jax.experimental.pallas import tpu as pltpu


def _round_up(x, m):
    return ((x + m - 1) // m) * m


def _spiral_kernel(cs_ref, ce_ref, co_ref, z_ref, o_ref, *, lanes):
    """out = A @ z per interleaved lane pair; pure VPU + XLU (no MXU)."""
    x = z_ref[...]                                   # (block_rows, lanes) f32
    last = x.ndim - 1
    # pltpu.roll matches jnp.roll: out[i] = x[(i - shift) % n]  (pinned).
    prv = pltpu.roll(x, 1, axis=last)                # prv[i] = x[i-1]
    nxt = pltpu.roll(x, lanes - 1, axis=last)        # nxt[i] = x[i+1]
    # Even lane i: a00*z0 + a01*z1 (z1 = nxt);  odd lane i: a11*z1 + a10*z0
    # (z0 = prv).  Zero coefficients mask the irrelevant / wrap-around terms.
    out = cs_ref[...] * x + ce_ref[...] * nxt + co_ref[...] * prv
    o_ref[...] = out.astype(o_ref.dtype)


def _coef_rows(A, lanes):
    """Per-lane coefficient rows: self, uses-next-lane, uses-previous-lane."""
    A = jnp.asarray(A, jnp.float32)
    even = (jnp.arange(lanes) % 2) == 0
    cs = jnp.where(even, A[0, 0], A[1, 1])[None, :]   # self component
    ce = jnp.where(even, A[0, 1], 0.0)[None, :]       # partner at lane i+1
    co = jnp.where(even, 0.0, A[1, 0])[None, :]       # partner at lane i-1
    return cs, ce, co


def _reference(A, z_t):
    """Fused XLA expression == torch bmv(A, z_t); also the tiny-batch fast path."""
    A = jnp.asarray(A, jnp.float32).astype(z_t.dtype)
    return jnp.stack(
        [A[0, 0] * z_t[:, 0] + A[0, 1] * z_t[:, 1],
         A[1, 0] * z_t[:, 0] + A[1, 1] * z_t[:, 1]],
        axis=-1,
    )


def spiral_dynamics(A, z_t, *, lanes=1024, block_bytes=2 << 20,
                    min_pallas_elems=4096, force_pallas=False):
    """out[b, :] = A @ z_t[b, :] for every batch row (torch bmv semantics)."""
    B, D = z_t.shape
    assert D == 2 and tuple(A.shape) == (2, 2)
    total = 2 * B

    # Tiny batches (or non-f32 inputs): the fused XLA expression beats a kernel
    # launch + DMA setup by orders of magnitude.  f32 is the module's dtype.
    if z_t.dtype != jnp.float32 or (not force_pallas and total < min_pallas_elems):
        return _reference(A, z_t)

    # ---- lane width: prefer an alignment that makes reshape a pure bitcast
    # (no jnp.pad, no output slice => no extra HBM passes).
    lanes = max(128, (int(lanes) // 128) * 128)
    candidates = sorted({lanes, 1024, 512, 256, 128}, reverse=True)
    aligned = next((c for c in candidates if total % (8 * c) == 0), None)
    ragged = aligned is None
    if not ragged:
        lanes = aligned

    flat = z_t.reshape(-1)                        # free: pairs stay lane-adjacent
    rows = _round_up(pl.cdiv(total, lanes), 8)    # sublane multiple only
    if ragged:
        # Pad only up to the sublane multiple (< 8*lanes extra elements).  The
        # pad + final slice each cost one HBM pass; batches with
        # 2*B % (8*lanes) == 0 take the copy-free path above.
        flat = jnp.pad(flat, (0, rows * lanes - total))
    z2d = flat.reshape(rows, lanes)

    # ---- block sizing: ~block_bytes per buffer (2 MiB default).  Live VMEM is
    # ~4x block (double-buffered in+out) = ~8 MiB: fits v5e's 16 MiB scoped
    # default and v6e/v7x's 32 MiB; well under v7x's 64 MiB physical.  Split
    # into >=2 grid steps when rows allow so ("parallel",) shards across v7x's
    # two TensorCores.  Guardrail keeps blocks from degenerating to 8x128.
    block_bytes = min(max(int(block_bytes), 1 << 19), 4 << 20)
    rows_per_block_cap = max(8, (block_bytes // (4 * lanes)) // 8 * 8)
    block_rows = min(rows_per_block_cap, max(8, _round_up(pl.cdiv(rows, 2), 8)))
    grid = (pl.cdiv(rows, block_rows),)           # partial last block is handled
                                                  # by Pallas (OOB writes dropped)

    cs, ce, co = _coef_rows(A, lanes)

    row_spec = pl.BlockSpec((1, lanes), lambda i: (0, 0))
    slab_spec = pl.BlockSpec((block_rows, lanes), lambda i: (i, 0))
    kernel = functools.partial(_spiral_kernel, lanes=lanes)

    out2d = pl.pallas_call(
        kernel,
        out_shape=jax.ShapeDtypeStruct((rows, lanes), z_t.dtype),
        grid_spec=pltpu.PrefetchScalarGridSpec(
            num_scalar_prefetch=0,
            grid=grid,
            in_specs=[row_spec, row_spec, row_spec, slab_spec],
            out_specs=slab_spec,
        ),
        compiler_params=pltpu.CompilerParams(
            dimension_semantics=("parallel",),
        ),
    )(cs, ce, co, z2d)

    if ragged:
        return out2d.reshape(-1)[:total].reshape(B, D)
    return out2d.reshape(B, D)


def make_A(w=math.pi / 16, rho=0.98):
    # Deterministic parameter construction, matching the PyTorch __init__.
    c, s = jnp.cos(jnp.float32(w)), jnp.sin(jnp.float32(w))
    return rho * jnp.array([[c, s], [-s, c]], dtype=jnp.float32)


if __name__ == "__main__":
    A = make_A()
    run = jax.jit(functools.partial(spiral_dynamics, force_pallas=True))

    # 1) Aligned, copy-free path: 2*B = 16 rows x 1024 lanes, 2-step grid.
    B1 = 8192
    z1 = jax.random.normal(jax.random.PRNGKey(0), (B1, 2), dtype=jnp.float32)
    out1 = jax.block_until_ready(run(A, z1))
    assert out1.shape == (B1, 2)
    assert jnp.allclose(out1, _reference(A, z1), atol=1e-6, rtol=1e-6)

    # 2) Ragged batch: minimal sublane padding + output slice fallback.
    B2 = 3000
    z2 = jax.random.normal(jax.random.PRNGKey(1), (B2, 2), dtype=jnp.float32)
    out2 = jax.block_until_ready(run(A, z2))
    assert out2.shape == (B2, 2)
    assert jnp.allclose(out2, _reference(A, z2), atol=1e-6, rtol=1e-6)

    # 3) Tiny batch: auto fast path (fused jnp, no kernel launch).
    B3 = 16
    z3 = jax.random.normal(jax.random.PRNGKey(2), (B3, 2), dtype=jnp.float32)
    out3 = jax.block_until_ready(spiral_dynamics(A, z3))
    assert out3.shape == (B3, 2)
    assert jnp.allclose(out3, _reference(A, z3), atol=1e-6, rtol=1e-6)

    print("KERNEL_OK")
</pallas_src>

<mosaic_0001>
module attributes {stable_mosaic.version = 11 : i64} {
  func.func @_spiral_kernel(%arg0: i32, %arg1: memref<1x1024xf32, #tpu.memory_space<vmem>>, %arg2: memref<1x1024xf32, #tpu.memory_space<vmem>>, %arg3: memref<1x1024xf32, #tpu.memory_space<vmem>>, %arg4: memref<8x1024xf32, #tpu.memory_space<vmem>>, %arg5: memref<8x1024xf32, #tpu.memory_space<vmem>>) attributes {dimension_semantics = [#tpu.dimension_semantics<parallel>], iteration_bounds = array<i64: 2>, scalar_prefetch = 0 : i64, scratch_operands = 0 : i64, tpu.core_type = #tpu.core_type<tc>, window_params = [{pipeline_mode = #tpu.pipeline_mode<synchronous>, transform_indices = @transform_0, window_bounds = array<i64: 1, 1024>}, {pipeline_mode = #tpu.pipeline_mode<synchronous>, transform_indices = @transform_1, window_bounds = array<i64: 1, 1024>}, {pipeline_mode = #tpu.pipeline_mode<synchronous>, transform_indices = @transform_2, window_bounds = array<i64: 1, 1024>}, {transform_indices = @transform_3, window_bounds = array<i64: 8, 1024>}, {transform_indices = @transform_4, window_bounds = array<i64: 8, 1024>}]} {
    %c0 = arith.constant 0 : index
    %c0_0 = arith.constant 0 : index
    %0 = vector.load %arg4[%c0, %c0_0] : memref<8x1024xf32, #tpu.memory_space<vmem>>, vector<8x1024xf32>
    %c1_i32 = arith.constant 1 : i32
    %1 = tpu.dynamic_rotate %0 by %c1_i32 dim 1 : vector<8x1024xf32>, i32 -> vector<8x1024xf32>
    %c1023_i32 = arith.constant 1023 : i32
    %2 = tpu.dynamic_rotate %0 by %c1023_i32 dim 1 : vector<8x1024xf32>, i32 -> vector<8x1024xf32>
    %c0_1 = arith.constant 0 : index
    %c0_2 = arith.constant 0 : index
    %3 = vector.load %arg1[%c0_1, %c0_2] : memref<1x1024xf32, #tpu.memory_space<vmem>>, vector<1x1024xf32>
    %4 = vector.broadcast %3 : vector<1x1024xf32> to vector<8x1024xf32>
    %5 = arith.mulf %4, %0 : vector<8x1024xf32>
    %c0_3 = arith.constant 0 : index
    %c0_4 = arith.constant 0 : index
    %6 = vector.load %arg2[%c0_3, %c0_4] : memref<1x1024xf32, #tpu.memory_space<vmem>>, vector<1x1024xf32>
    %7 = vector.broadcast %6 : vector<1x1024xf32> to vector<8x1024xf32>
    %8 = arith.mulf %7, %2 : vector<8x1024xf32>
    %9 = arith.addf %5, %8 : vector<8x1024xf32>
    %c0_5 = arith.constant 0 : index
    %c0_6 = arith.constant 0 : index
    %10 = vector.load %arg3[%c0_5, %c0_6] : memref<1x1024xf32, #tpu.memory_space<vmem>>, vector<1x1024xf32>
    %11 = vector.broadcast %10 : vector<1x1024xf32> to vector<8x1024xf32>
    %12 = arith.mulf %11, %1 : vector<8x1024xf32>
    %13 = arith.addf %9, %12 : vector<8x1024xf32>
    %c0_7 = arith.constant 0 : index
    %c0_8 = arith.constant 0 : index
    %14 = vector.load %arg5[%c0_7, %c0_8] : memref<8x1024xf32, #tpu.memory_space<vmem>>, vector<8x1024xf32>
    tpu.vector_store %arg5[%c0_7, %c0_8], %13 {strides = array<i32>} : memref<8x1024xf32, #tpu.memory_space<vmem>>, vector<8x1024xf32>,
    return
  }
  func.func @transform_0(%arg0: i32) -> (i32, i32) {
    %c0_i32 = arith.constant 0 : i32
    %c0_i32_0 = arith.constant 0 : i32
    %c0_i32_1 = arith.constant 0 : i32
    return %c0_i32, %c0_i32_0 : i32, i32
  }
  func.func @transform_1(%arg0: i32) -> (i32, i32) {
    %c0_i32 = arith.constant 0 : i32
    %c0_i32_0 = arith.constant 0 : i32
    %c0_i32_1 = arith.constant 0 : i32
    return %c0_i32, %c0_i32_0 : i32, i32
  }
  func.func @transform_2(%arg0: i32) -> (i32, i32) {
    %c0_i32 = arith.constant 0 : i32
    %c0_i32_0 = arith.constant 0 : i32
    %c0_i32_1 = arith.constant 0 : i32
    return %c0_i32, %c0_i32_0 : i32, i32
  }
  func.func @transform_3(%arg0: i32) -> (i32, i32) {
    %c0_i32 = arith.constant 0 : i32
    %c0_i32_0 = arith.constant 0 : i32
    return %arg0, %c0_i32 : i32, i32
  }
  func.func @transform_4(%arg0: i32) -> (i32, i32) {
    %c0_i32 = arith.constant 0 : i32
    %c0_i32_0 = arith.constant 0 : i32
    return %arg0, %c0_i32 : i32, i32
  }
}

</mosaic_0001>

<bundles_post_ra>
// kernel: spiral_dynamics.1
= control target key start
LH: loop header
LB: loop body
LE: loop exit
PB: predicated region body
PF: predicated region fallthrough
CT: control target
= control target key end

     0   :  { %s545_s15 = smov 0   ;;  %s706_s0 = inlined_call_operand.vmem [shape: f32[1,1024], index: 0, kind: input, shape index: {}]   ;;  %s707_s1 = inlined_call_operand.vmem [shape: f32[1,1024], index: 1, kind: input, shape index: {}]   ;;  %s708_s2 = inlined_call_operand.vmem [shape: f32[1,1024], index: 2, kind: input, shape index: {}]   ;;  %s709_s3 = inlined_call_operand.vmem [shape: f32[16,1024], index: 3, kind: input, shape index: {}]   ;;  %s710_s4 = inlined_call_operand.vmem [shape: f32[16,1024], index: 4, kind: output, shape index: {}]  }
   0x1 LB: > { %s487_s16 = sadd.s32 4294967295, %s516_s15   ;;  %p491_p0 = scmp.ge.s32.totalorder %s516_s15, 1  ;;  %s516_s15 = sphi %s545_s15, %s14_s15  }
   0x2   : > { %p162_p1 = scmp.lt.s32.totalorder %s516_s15, 3 }
   0x4   : > { %p163_p2 = pnand %p491_p0, %p162_p1 }
   0x5   : > { %p188_p3 = scmp.lt.s32.totalorder (!%p163_p2), %s487_s16, 1  ;;  %s518_s21 = smov (!%p163_p2), 127   ;;  %v222_v8 = vlaneseq (!%p163_p2)  ;;  %v578_v16 = vld [vmem:[%s706_s0] sm:$0xff] (!%p163_p2) }
   0x6   : > { %166 = sbr.rel (%p163_p2) target bundleno = 167 (0xa7), region = 36  ;;  %s519_s22 = smov (!%p163_p2), 1   ;;  %v593_v23 = vld [vmem:[%s707_s1] sm:$0xff] (!%p163_p2) }
   0x7   : > { %v261_v9 = vshrl.u32 (!%p163_p2), %v222_v8, 7  ;;  %v573_v13 = vand.u32 (!%p163_p2), 127, %v222_v8  ;;  %v615_v35 = vld [vmem:[%s708_s2] sm:$0xff] (!%p163_p2) }
   0x9   : > { %v571_v12 = vsub.s32 (!%p163_p2), 2, %v261_v9  ;;  %v580_v17 = vsub.s32 (!%p163_p2), 0, %v261_v9  ;;  %v266_v18 = vsub.s32 (!%p163_p2), 1, %v261_v9  ;;  %v582_v19 = vsub.s32 (!%p163_p2), 3, %v261_v9 }
   0xa   : > { %v584_v20 = vsub.s32 (!%p163_p2), 5, %v261_v9  ;;  %v586_v21 = vsub.s32 (!%p163_p2), 4, %v261_v9  ;;  %v588_v22 = vsub.s32 (!%p163_p2), 7, %v261_v9  ;;  %vm249_vm0 = vcmp.lt.s32.totalorder (!%p163_p2), %v573_v13, 127 }
   0xb   : > { %v271_v24 = vrot.slane (!%p163_p2), %v578_v16, %v571_v12  ;;  %v263_v27 = vrot.slane (!%p163_p2), %v578_v16, %v580_v17  ;;  %v267_v28 = vrot.slane (!%p163_p2), %v578_v16, %v266_v18  ;;  %v275_v29 = vrot.slane (!%p163_p2), %v578_v16, %v582_v19 }
   0xc   : > { %v317_v30 = vrot.slane (!%p163_p2), %v593_v23, %v266_v18  ;;  %v283_v31 = vrot.slane (!%p163_p2), %v578_v16, %v584_v20  ;;  %v279_v32 = vrot.slane (!%p163_p2), %v578_v16, %v586_v21  ;;  %v291_v33 = vrot.slane (!%p163_p2), %v578_v16, %v588_v22 }
   0xd   : > { %s712_s16 = smov (!%p188_p3, %s487_s16), 1  ;;  %v617_v37 = vsub.s32 6, %v261_v9  ;;  %v321_v38 = vrot.slane %v593_v23, %v571_v12  ;;  %v325_v44 = vrot.slane %v593_v23, %v582_v19  ;;  %vm224_vm1 = vcmp.lt.s32.totalorder %v573_v13, 1 }
   0xe   : > { %s498_s17 = sshll.u32 %s712_s16, 6  ;;  %v375_v47 = vrot.slane %v615_v35, %v266_v18  ;;  %v313_v54 = vrot.slane %v593_v23, %v580_v17  ;;  %v329_v55 = vrot.slane %v593_v23, %v586_v21  ;;  %v333_v59 = vrot.slane %v593_v23, %v584_v20 }
   0xf   : > { %s192_s20 = scalar_lea.vmem %s709_s3, %s498_s17  ;;  %v287_v52 = vrot.slane %v578_v16, %v617_v37  ;;  %v379_v61 = vrot.slane %v615_v35, %v571_v12  ;;  %s653_s5 = scalar_lea.vmem %s710_s4, %s498_s17 }
  0x10   : > { %v200_v0 = vld [vmem:[%s192_s20 + $0x10] sm:$0xff]  ;;  %v198_v1 = vld [vmem:[%s192_s20] sm:$0xff]  ;;  %v561_v2 = vld [vmem:[%s192_s20 + $0x18] sm:$0xff] }
  0x11   : > { %237 = vrot.lane.b32.xlu1 %v200_v0, %s518_s21  ;;  %233 = vrot.lane.b32.xlu0 %v198_v1, %s518_s21  ;;  %v199_v3 = vld [vmem:[%s192_s20 + $0x8] sm:$0xff]  ;;  %v202_v5 = vld [vmem:[%s192_s20 + $0x20] sm:$0xff]  ;;  %v302_v36 = vmul.f32 %v271_v24, %v200_v0  ;;  %v621_v41 = vmul.f32 %v263_v27, %v198_v1  ;;  %v303_v48 = vmul.f32 %v275_v29, %v561_v2 }
  0x12   : > { %v203_v4 = vld [vmem:[%s192_s20 + $0x28] sm:$0xff]  ;;  %v205_v6 = vld [vmem:[%s192_s20 + $0x38] sm:$0xff]  ;;  %v564_v7 = vld [vmem:[%s192_s20 + $0x30] sm:$0xff]  ;;  %v301_v42 = vmul.f32 %v267_v28, %v199_v3  ;;  %v304_v50 = vmul.f32 %v279_v32, %v202_v5  ;;  %v371_v27 = vrot.slane %v615_v35, %v580_v17  ;;  %v395_v28 = vrot.slane %v615_v35, %v617_v37 }
  0x13   : > { %v305_v49 = vmul.f32 %v283_v31, %v203_v4  ;;  %v307_v51 = vmul.f32 %v291_v33, %v205_v6  ;;  %v399_v33 = vrot.slane %v615_v35, %v588_v22 }
  0x15   : > { %239 = vrot.lane.b32.xlu1 %v561_v2, %s518_s21  ;;  %235 = vrot.lane.b32.xlu0 %v199_v3, %s518_s21 }
  0x19   : > { %243 = vrot.lane.b32.xlu1 %v203_v4, %s518_s21  ;;  %241 = vrot.lane.b32.xlu0 %v202_v5, %s518_s21 }
  0x1d   : > { %247 = vrot.lane.b32.xlu1 %v205_v6, %s518_s21  ;;  %245 = vrot.lane.b32.xlu0 %v564_v7, %s518_s21 }
  0x21   : > { %208 = vrot.lane.b32.xlu1 %v199_v3, %s519_s22  ;;  %206 = vrot.lane.b32.xlu0 %v198_v1, %s519_s22  ;;  %v383_v1 = vrot.slane %v615_v35, %v582_v19  ;;  %v337_v3 = vrot.slane %v593_v23, %v617_v37 }
  0x25   : > { %212 = vrot.lane.b32.xlu1 %v561_v2, %s519_s22  ;;  %210 = vrot.lane.b32.xlu0 %v200_v0, %s519_s22  ;;  %v341_v2 = vrot.slane %v593_v23, %v588_v22 }
  0x29   : > { %216 = vrot.lane.b32.xlu1 %v203_v4, %s519_s22  ;;  %214 = vrot.lane.b32.xlu0 %v202_v5, %s519_s22  ;;  %v387_v5 = vrot.slane %v615_v35, %v586_v21 }
  0x2d   : > { %220 = vrot.lane.b32.xlu1 %v205_v6, %s519_s22  ;;  %218 = vrot.lane.b32.xlu0 %v564_v7, %s519_s22 }
  0x83   : > { %v238_v10 = vpop.permute.xlu1 %237  ;;  %v569_v11 = vpop.permute.xlu0 %233 }
  0x87   : > { %v240_v14 = vpop.permute.xlu1 %239  ;;  %v236_v15 = vpop.permute.xlu0 %235 }
  0x88   : > { %v255_v34 = vsel %vm249_vm0, %v236_v15, %v238_v10  ;;  %v254_v43 = vsel %vm249_vm0, %v238_v10, %v240_v14  ;;  %v256_v8 = vsel %vm249_vm0, %v569_v11, %v236_v15 }
  0x89   : > { %v351_v45 = vmul.f32 %v317_v30, %v255_v34  ;;  %v352_v53 = vmul.f32 %v321_v38, %v254_v43  ;;  %v350_v29 = vmul.f32 %v313_v54, %v256_v8 }
  0x8b   : > { %v244_v25 = vpop.permute.xlu1 %243  ;;  %v242_v26 = vpop.permute.xlu0 %241  ;;  %v359_v62 = vadd.f32 %v351_v45, %v301_v42  ;;  %v360_v6 = vadd.f32 %v352_v53, %v302_v36  ;;  %v358_v42 = vadd.f32 %v350_v29, %v621_v41 }
  0x8c   : > { %v253_v46 = vsel %vm249_vm0, %v240_v14, %v242_v26  ;;  %v252_v63 = vsel %vm249_vm0, %v242_v26, %v244_v25  ;;  %v391_v14 = vrot.slane %v615_v35, %v584_v20  ;;  %v306_v26 = vmul.f32 %v287_v52, %v564_v7 }
  0x8d   : > { %v353_v58 = vmul.f32 %v325_v44, %v253_v46  ;;  %v354_v16 = vmul.f32 %v329_v55, %v252_v63 }
  0x8f   : > { %v248_v39 = vpop.permute.xlu1 %247  ;;  %v246_v40 = vpop.permute.xlu0 %245  ;;  %v361_v18 = vadd.f32 %v353_v58, %v303_v48  ;;  %v362_v7 = vadd.f32 %v354_v16, %v304_v50 }
  0x90   : > { %v251_v4 = vsel %vm249_vm0, %v244_v25, %v246_v40  ;;  %v257_v21 = vsel %vm249_vm0, %v248_v39, %v569_v11  ;;  %v250_v20 = vsel %vm249_vm0, %v246_v40, %v248_v39 }
  0x91   : > { %v355_v24 = vmul.f32 %v333_v59, %v251_v4  ;;  %v357_v34 = vmul.f32 %v341_v2, %v257_v21  ;;  %v356_v17 = vmul.f32 %v337_v3, %v250_v20 }
  0x93   : > { %v209_v56 = vpop.permute.xlu1 %208  ;;  %v207_v57 = vpop.permute.xlu0 %206  ;;  %v363_v39 = vadd.f32 %v355_v24, %v305_v49  ;;  %v365_v45 = vadd.f32 %v357_v34, %v307_v51  ;;  %v364_v49 = vadd.f32 %v356_v17, %v306_v26 }
  0x94   : > { %v231_v60 = vsel %vm224_vm1, %v207_v57, %v209_v56 }
  0x95   : > { %v409_v0 = vmul.f32 %v375_v47, %v231_v60 }
  0x97   : > { %v417_v9 = vadd.f32 %v409_v0, %v359_v62  ;;  %v213_v10 = vpop.permute.xlu1 %212  ;;  %v211_v12 = vpop.permute.xlu0 %210 }
  0x98   : > { %v229_v19 = vsel %vm224_vm1, %v211_v12, %v213_v10  ;;  %v230_v23 = vsel %vm224_vm1, %v209_v56, %v211_v12 }
  0x99   : > { %425 = vst [vmem:[%s653_s5 + $0x8] sm:$0xff] %v417_v9  ;;  %v410_v15 = vmul.f32 %v379_v61, %v230_v23  ;;  %v411_v25 = vmul.f32 %v383_v1, %v229_v19 }
  0x9b   : > { %v418_v30 = vadd.f32 %v410_v15, %v360_v6  ;;  %v419_v11 = vadd.f32 %v411_v25, %v361_v18  ;;  %v217_v31 = vpop.permute.xlu1 %216  ;;  %v215_v32 = vpop.permute.xlu0 %214 }
  0x9c   : > { %v227_v36 = vsel %vm224_vm1, %v215_v32, %v217_v31  ;;  %v228_v38 = vsel %vm224_vm1, %v213_v10, %v215_v32 }
  0x9d   : > { %426 = vst [vmem:[%s653_s5 + $0x10] sm:$0xff] %v418_v30  ;;  %427 = vst [vmem:[%s653_s5 + $0x18] sm:$0xff] %v419_v11  ;;  %v412_v37 = vmul.f32 %v387_v5, %v228_v38  ;;  %v413_v40 = vmul.f32 %v391_v14, %v227_v36 }
  0x9f   : > { %v420_v43 = vadd.f32 %v412_v37, %v362_v7  ;;  %v421_v22 = vadd.f32 %v413_v40, %v363_v39  ;;  %v221_v35 = vpop.permute.xlu1 %220  ;;  %v219_v44 = vpop.permute.xlu0 %218 }
  0xa0   : > { %v232_v46 = vsel %vm224_vm1, %v221_v35, %v207_v57  ;;  %v225_v47 = vsel %vm224_vm1, %v219_v44, %v221_v35  ;;  %v226_v48 = vsel %vm224_vm1, %v217_v31, %v219_v44 }
  0xa1   : > { %428 = vst [vmem:[%s653_s5 + $0x20] sm:$0xff] %v420_v43  ;;  %429 = vst [vmem:[%s653_s5 + $0x28] sm:$0xff] %v421_v22  ;;  %v408_v41 = vmul.f32 %v371_v27, %v232_v46  ;;  %v414_v50 = vmul.f32 %v395_v28, %v226_v48  ;;  %v415_v52 = vmul.f32 %v399_v33, %v225_v47 }
  0xa3   : > { %v416_v53 = vadd.f32 %v408_v41, %v358_v42  ;;  %v422_v54 = vadd.f32 %v414_v50, %v364_v49  ;;  %v423_v55 = vadd.f32 %v415_v52, %v365_v45 }
  0xa5   : > { %424 = vst [vmem:[%s653_s5] sm:$0xff] %v416_v53  ;;  %430 = vst [vmem:[%s653_s5 + $0x30] sm:$0xff] %v422_v54 }
  0xa6   : > { %431 = vst [vmem:[%s653_s5 + $0x38] sm:$0xff] %v423_v55 }
  0xa7 PF: > { %s14_s15 = sadd.s32 1, %s516_s15  }
  0xa8   : > { %p11_p4 = scmp.ge.s32.totalorder %s14_s15, 4  }
  0xaa   :  { %13 = sbr.rel (!%p11_p4) target bundleno = 1 (0x1), region = 66 }

</bundles_post_ra>
